<compile_context>
chip_gen: v7x
topology: tpu7x:2x2x1
jax: 0.10.0
libtpu: 0.0.40
codegen_flags: <defaults>
</compile_context>

<pallas_src>
import functools
import math

import jax
import jax.numpy as jnp
from jax.experimental import pallas as pl
from jax.experimental.pallas import tpu as pltpu


# -----------------------------------------------------------------------------
# pltpu.roll direction guard
# -----------------------------------------------------------------------------
# All tap shifts need shifted[..., j] = x[..., j + d].  With jnp.roll semantics
# that is a roll by (n - d).  A tiny probe pins the convention at runtime so
# the script is robust to either sign convention of pltpu.roll.
_ROLL_FLIP = False


def _probe_roll_direction():
    def kern(x_ref, o_ref):
        o_ref[...] = pltpu.roll(x_ref[...], 1, 1)

    x = jax.lax.broadcasted_iota(jnp.float32, (8, 128), 1)
    y = pl.pallas_call(
        kern, out_shape=jax.ShapeDtypeStruct((8, 128), jnp.float32))(x)
    global _ROLL_FLIP
    # jnp.roll semantics: roll(+1) brings x[127] into slot 0.
    _ROLL_FLIP = bool(y[0, 0] != 127.0)


def _shift_up(x, d, axis):
    """shifted[..., j, ...] = x[..., j + d, ...] (circular along `axis`)."""
    n = x.shape[axis]
    d = d % n
    if d == 0:
        return x
    shift = d if _ROLL_FLIP else (n - d)
    return pltpu.roll(x, shift, axis)


def _round_up(x, m):
    return ((x + m - 1) // m) * m


# -----------------------------------------------------------------------------
# Pallas kernels
# -----------------------------------------------------------------------------
def _neck_conv_kernel(z_ref, x_ref, wn_ref, bn_ref,
                      wk_ref, bk_ref, ws_ref, bs_ref,
                      ko_ref, so_ref, *, sz, sx):
    """AdjustLayer (1x1 conv + BN) fused with conv_kernel / conv_search
    (3x3 conv + BN + ReLU) for one pyramid level and one batch element.

    Channel-first layout: channels on sublanes, row-major spatial flattened on
    a 128-padded lane axis.  The 3x3 conv output is kept in "input geometry":
    output lane i*S + j holds the result for pixel (i, j); lanes with i or j
    >= S-2 (and the 128-pad) contain garbage that is never read downstream.
    Each tap (u, v) is a lane shift by u*S + v followed by a (2H,H)x(H,M)
    matmul with the BN scale folded into the weights.
    """
    wn = wn_ref[...]
    bn = bn_ref[...]

    def branch(inp_ref, wt_ref, b_ref, out_ref, stride):
        # 1x1 neck conv + BN bias (no ReLU in AdjustLayer), VMEM-resident.
        neck = jnp.dot(wn, inp_ref[...],
                       preferred_element_type=jnp.float32) + bn
        neck = neck.astype(inp_ref.dtype)
        acc = jnp.zeros(out_ref.shape, jnp.float32)
        for u in range(3):
            for v in range(3):
                shifted = _shift_up(neck, u * stride + v, 1)
                acc = acc + jnp.dot(wt_ref[u * 3 + v], shifted,
                                    preferred_element_type=jnp.float32)
        out_ref[...] = jnp.maximum(acc + b_ref[...], 0.0).astype(out_ref.dtype)

    branch(z_ref, wk_ref, bk_ref, ko_ref, sz)   # template -> conv_kernel
    branch(x_ref, ws_ref, bs_ref, so_ref, sx)   # search   -> conv_search


def _xcorr_kernel(*refs, sz, sx, kext):
    """Depthwise cross-correlation, channel-first, one (batch, branch) block.

    refs = (s_0..s_{L-1}, k_0..k_{L-1}, out).  s_l: (H, Mx) search conv output
    in input geometry (row stride sx); k_l: (H, Mz) template conv output in
    input geometry (row stride sz), valid taps at lanes u*sz+v, u,v < kext.
    Output lane i*sx + j holds the xcorr result for (i, j); the garbage border
    is never read by the head.  Each tap is a roll (XLU) + per-row scale (VPU)
    + f32 accumulate, so the 25-tap loop stays in ~30 vregs (no spills).
    """
    o_ref = refs[-1]
    nlev = (len(refs) - 1) // 2
    s_refs = refs[:nlev]
    k_refs = refs[nlev:2 * nlev]
    h, mx = s_refs[0].shape
    for lvl in range(nlev):
        s = s_refs[lvl][...].astype(jnp.float32)
        k = k_refs[lvl][...].astype(jnp.float32)
        acc = jnp.zeros((h, mx), jnp.float32)
        for u in range(kext):
            for v in range(kext):
                tap = k[:, u * sz + v:u * sz + v + 1]            # (H, 1)
                acc = acc + _shift_up(s, u * sx + v, 1) * tap
        o_ref[lvl * h:(lvl + 1) * h, :] = acc.astype(o_ref.dtype)


def _head_kernel(f_ref, w1_ref, b1_ref, w2_ref, b2_ref, o_ref, *, hdim):
    """Grouped 1x1+BN+ReLU followed by the fused (softmax-weighted) 1x1+bias.

    Channel-first: W1 is applied as one (H,H) matmul per (branch, level) group
    (block-diagonal structure -> no wasted MXU columns), and the output is
    (n_cls + n_loc, M) with M = Ho*Wo on the lane axis, so the final NCHW
    layout is a free reshape (no transpose, lane-dense stores)."""
    ngroups = w1_ref.shape[0]
    cout, m = o_ref.shape
    y = jnp.zeros((cout, m), jnp.float32)
    for g in range(ngroups):
        fg = f_ref[g * hdim:(g + 1) * hdim, :]
        hg = jnp.dot(w1_ref[g], fg, preferred_element_type=jnp.float32)
        hg = jnp.maximum(hg + b1_ref[g * hdim:(g + 1) * hdim, :], 0.0)
        y = y + jnp.dot(w2_ref[g], hg.astype(f_ref.dtype),
                        preferred_element_type=jnp.float32)
    o_ref[...] = (y + b2_ref[...]).astype(o_ref.dtype)


# -----------------------------------------------------------------------------
# pallas_call wrappers
# -----------------------------------------------------------------------------
def _neck_conv_call(z_p, x_p, lvl, sz, sx):
    B, cin, mzp = z_p.shape
    mxp = x_p.shape[2]
    h = lvl["wn"].shape[0]
    h2 = lvl["wk"].shape[1]
    kern = functools.partial(_neck_conv_kernel, sz=sz, sx=sx)
    return pl.pallas_call(
        kern,
        out_shape=(jax.ShapeDtypeStruct((B, h2, mzp), z_p.dtype),
                   jax.ShapeDtypeStruct((B, h2, mxp), x_p.dtype)),
        grid=(B,),
        in_specs=[pl.BlockSpec((None, cin, mzp), lambda b: (b, 0, 0)),
                  pl.BlockSpec((None, cin, mxp), lambda b: (b, 0, 0)),
                  pl.BlockSpec((h, cin), lambda b: (0, 0)),
                  pl.BlockSpec((h, 1), lambda b: (0, 0)),
                  pl.BlockSpec((9, h2, h), lambda b: (0, 0, 0)),
                  pl.BlockSpec((h2, 1), lambda b: (0, 0)),
                  pl.BlockSpec((9, h2, h), lambda b: (0, 0, 0)),
                  pl.BlockSpec((h2, 1), lambda b: (0, 0))],
        out_specs=(pl.BlockSpec((None, h2, mzp), lambda b: (b, 0, 0)),
                   pl.BlockSpec((None, h2, mxp), lambda b: (b, 0, 0))),
        compiler_params=pltpu.CompilerParams(
            dimension_semantics=("parallel",)),
    )(z_p, x_p, lvl["wn"], lvl["bn"], lvl["wk"], lvl["bk"],
      lvl["ws"], lvl["bs"])


def _xcorr_call(so_list, ko_list, hid, sz, sx, kext):
    B = so_list[0].shape[0]
    mxp = so_list[0].shape[2]
    mzp = ko_list[0].shape[2]
    L = len(so_list)
    ctot = 2 * L * hid
    kern = functools.partial(_xcorr_kernel, sz=sz, sx=sx, kext=kext)
    s_specs = [pl.BlockSpec((None, hid, mxp), lambda b, g: (b, g, 0))
               for _ in range(L)]
    k_specs = [pl.BlockSpec((None, hid, mzp), lambda b, g: (b, g, 0))
               for _ in range(L)]
    return pl.pallas_call(
        kern,
        out_shape=jax.ShapeDtypeStruct((B, ctot, mxp), so_list[0].dtype),
        grid=(B, 2),                                  # (batch, branch)
        in_specs=s_specs + k_specs,
        out_specs=pl.BlockSpec((None, L * hid, mxp), lambda b, g: (b, g, 0)),
        compiler_params=pltpu.CompilerParams(
            dimension_semantics=("parallel", "parallel")),
    )(*so_list, *ko_list)


def _head_call(feat, w1, b1, w2, b2):
    B, ctot, m = feat.shape
    G, hdim, _ = w1.shape
    cout = w2.shape[1]
    kern = functools.partial(_head_kernel, hdim=hdim)
    return pl.pallas_call(
        kern,
        out_shape=jax.ShapeDtypeStruct((B, cout, m), jnp.float32),
        grid=(B,),
        in_specs=[pl.BlockSpec((None, ctot, m), lambda b: (b, 0, 0)),
                  pl.BlockSpec((G, hdim, hdim), lambda b: (0, 0, 0)),
                  pl.BlockSpec((ctot, 1), lambda b: (0, 0)),
                  pl.BlockSpec((G, cout, hdim), lambda b: (0, 0, 0)),
                  pl.BlockSpec((cout, 1), lambda b: (0, 0))],
        out_specs=pl.BlockSpec((None, cout, m), lambda b: (b, 0, 0)),
        compiler_params=pltpu.CompilerParams(
            dimension_semantics=("parallel",)),
    )(feat, w1, b1, w2, b2)


# -----------------------------------------------------------------------------
# Parameter packing (BN fold, branch/level fusion, softmax weight fold)
# -----------------------------------------------------------------------------
def prepare_params(params, dtype):
    """Fold BN scales into conv weights, pack tap-major 3x3 weights, and fold
    the softmax level-fusion weights into the final 1x1 conv (exact: linear).

    Fused channel order downstream of the xcorr is branch-major:
    c = g*(L*H) + l*H + h with g in {0: cls, 1: loc}."""
    L = len(params["neck"])
    H = params["neck"][0]["w"].shape[0]

    levels = []
    for lv in range(L):
        nk = params["neck"][lv]
        wn = (nk["w"].reshape(H, -1) * nk["scale"][:, None]).astype(dtype)
        bn = nk["bias"][:, None].astype(jnp.float32)
        rp = params["rpn"][lv]

        def fold_taps(cls_w, cls_s, loc_w, loc_s):
            taps = []
            for u in range(3):
                for v in range(3):
                    taps.append(jnp.concatenate(
                        [cls_w[:, :, u, v] * cls_s[:, None],
                         loc_w[:, :, u, v] * loc_s[:, None]], axis=0))
            return jnp.stack(taps).astype(dtype)          # (9, 2H, H)

        wk = fold_taps(rp["cls"]["wk"], rp["cls"]["sk"],
                       rp["loc"]["wk"], rp["loc"]["sk"])
        bk = jnp.concatenate([rp["cls"]["bk"],
                              rp["loc"]["bk"]])[:, None].astype(jnp.float32)
        ws = fold_taps(rp["cls"]["ws"], rp["cls"]["ss"],
                       rp["loc"]["ws"], rp["loc"]["ss"])
        bs = jnp.concatenate([rp["cls"]["bs"],
                              rp["loc"]["bs"]])[:, None].astype(jnp.float32)
        levels.append(dict(wn=wn, bn=bn, wk=wk, bk=bk, ws=ws, bs=bs))

    cw = jax.nn.softmax(params["cls_weight"], axis=0)
    lw = jax.nn.softmax(params["loc_weight"], axis=0)
    n_cls = params["rpn"][0]["cls"]["w2"].shape[0]
    n_loc = params["rpn"][0]["loc"]["w2"].shape[0]
    cout = n_cls + n_loc
    w1 = jnp.zeros((2 * L, H, H), jnp.float32)
    b1 = jnp.zeros((2 * L * H, 1), jnp.float32)
    w2 = jnp.zeros((2 * L, cout, H), jnp.float32)
    b2 = jnp.zeros((cout, 1), jnp.float32)
    for g, (name, fw, off, nout) in enumerate(
            (("cls", cw, 0, n_cls), ("loc", lw, n_cls, n_loc))):
        for lv in range(L):
            br = params["rpn"][lv][name]
            gi = g * L + lv
            w1 = w1.at[gi].set(br["w1"].reshape(H, H) * br["s1"][:, None])
            b1 = b1.at[gi * H:(gi + 1) * H, 0].set(br["b1"])
            w2 = w2.at[gi, off:off + nout, :].set(
                br["w2"].reshape(nout, H) * fw[lv])
            b2 = b2.at[off:off + nout, 0].add(fw[lv] * br["b2"])
    return dict(levels=levels, w1=w1.astype(dtype), b1=b1,
                w2=w2.astype(dtype), b2=b2, n_cls=n_cls, n_loc=n_loc)


# -----------------------------------------------------------------------------
# Forward pass
# -----------------------------------------------------------------------------
def log_softmax_cls(cls_nchw):
    """SiamRPNPP.log_softmax: (B, 2A, H, W) -> (B, A, H, W, 2) log-softmax."""
    B, A2, H, W = cls_nchw.shape
    c = cls_nchw.reshape(B, 2, A2 // 2, H, W)
    c = jnp.transpose(c, (0, 2, 3, 4, 1))
    return jax.nn.log_softmax(c, axis=4)


def siamrpnpp_forward(z_feats, x_feats, params, compute_dtype=jnp.bfloat16):
    """Forward starting from backbone feature maps (NCHW lists of 3 levels)."""
    L = len(z_feats)
    B = z_feats[0].shape[0]
    H = params["neck"][0]["w"].shape[0]
    pp = prepare_params(params, compute_dtype)
    n_cls = pp["n_cls"]

    # Template center-crop before the neck (a center crop commutes with the
    # 1x1 conv + BN, so this is exact and cuts template rows 81 -> 49).
    def maybe_crop(t, center=7):
        if t.shape[-1] < 20:
            lo = (t.shape[-1] - center) // 2
            t = t[:, :, lo:lo + center, lo:lo + center]
        return t

    z_c = [maybe_crop(z) for z in z_feats]
    sz, sx = z_c[0].shape[-1], x_feats[0].shape[-1]
    mz, mx = sz * sz, sx * sx
    mzp, mxp = _round_up(mz, 128), _round_up(mx, 128)

    # Fused AdjustLayer + conv_kernel/conv_search, one call per level so each
    # level uses its exact Cin.  The NCHW->channel-first flatten is just a
    # reshape (NCHW is already channels-on-rows); only the 128-lane pad copies.
    ko_list, so_list = [], []
    for lv in range(L):
        zp = jnp.pad(z_c[lv].reshape(B, -1, mz).astype(compute_dtype),
                     ((0, 0), (0, 0), (0, mzp - mz)))
        xp = jnp.pad(x_feats[lv].reshape(B, -1, mx).astype(compute_dtype),
                     ((0, 0), (0, 0), (0, mxp - mx)))
        ko, so = _neck_conv_call(zp, xp, pp["levels"][lv], sz, sx)
        ko_list.append(ko)
        so_list.append(so)

    kext = sz - 2                       # template conv output extent (5)
    ho = (sx - 2) - kext + 1            # xcorr output extent (18)

    # Depthwise xcorr, all levels fused on the channel (sublane) axis,
    # (batch, branch) as parallel grid axes.
    xo = _xcorr_call(so_list, ko_list, H, sz, sx, kext)   # (B, 2*L*H, mxp)

    # Compact the valid (ho x ho) window out of the input-geometry lanes.
    ctot = 2 * L * H
    feat = xo[:, :, :mx].reshape(B, ctot, sx, sx)[:, :, :ho, :ho]
    feat = feat.reshape(B, ctot, ho * ho)

    out = _head_call(feat, pp["w1"], pp["b1"], pp["w2"], pp["b2"])
    out = out.reshape(B, -1, ho, ho)                       # already NCHW
    cls = out[:, :n_cls]
    loc = out[:, n_cls:]
    # TODO(synk): log_softmax is a tiny op left in plain JAX.
    return cls, loc, log_softmax_cls(cls)


# -----------------------------------------------------------------------------
# Plain-JAX reference (mirrors the PyTorch module) for numerical verification
# -----------------------------------------------------------------------------
def _reference_forward(z_feats, x_feats, params):
    hi = jax.lax.Precision.HIGHEST

    def conv2d(x, w, groups=1):
        return jax.lax.conv_general_dilated(
            x, w, (1, 1), "VALID",
            dimension_numbers=("NCHW", "OIHW", "NCHW"),
            feature_group_count=groups, precision=hi)

    def bn(x, scale, bias):
        return x * scale[None, :, None, None] + bias[None, :, None, None]

    def adjust(x, p):
        x = bn(conv2d(x, p["w"]), p["scale"], p["bias"])
        if x.shape[3] < 20:
            l = (x.shape[3] - 7) // 2
            x = x[:, :, l:l + 7, l:l + 7]
        return x

    def xcorr_depthwise(x, kernel):
        b, c = kernel.shape[0], kernel.shape[1]
        xr = x.reshape(1, b * c, x.shape[2], x.shape[3])
        kr = kernel.reshape(b * c, 1, kernel.shape[2], kernel.shape[3])
        out = conv2d(xr, kr, groups=b * c)
        return out.reshape(b, c, out.shape[2], out.shape[3])

    def branch(z, x, p):
        k = jax.nn.relu(bn(conv2d(z, p["wk"]), p["sk"], p["bk"]))
        s = jax.nn.relu(bn(conv2d(x, p["ws"]), p["ss"], p["bs"]))
        f = xcorr_depthwise(s, k)
        h = jax.nn.relu(bn(conv2d(f, p["w1"]), p["s1"], p["b1"]))
        return conv2d(h, p["w2"]) + p["b2"][None, :, None, None]

    L = len(z_feats)
    zf = [adjust(z_feats[i], params["neck"][i]) for i in range(L)]
    xf = [adjust(x_feats[i], params["neck"][i]) for i in range(L)]
    cw = jax.nn.softmax(params["cls_weight"], axis=0)
    lw = jax.nn.softmax(params["loc_weight"], axis=0)
    cls = sum(cw[i] * branch(zf[i], xf[i], params["rpn"][i]["cls"])
              for i in range(L))
    loc = sum(lw[i] * branch(zf[i], xf[i], params["rpn"][i]["loc"])
              for i in range(L))
    return cls, loc


# -----------------------------------------------------------------------------
# Deterministic parameter init (PyTorch OIHW layout, inference BN pre-folded)
# -----------------------------------------------------------------------------
def init_params(key, in_channels, hidden, anchor_num):
    keys = iter(jax.random.split(key, 256))

    def conv_w(cout, cin, k):
        fan_in = float(cin * k * k)
        w = jax.random.normal(next(keys), (cout, cin, k, k), jnp.float32)
        return w * (1.0 / math.sqrt(fan_in))

    def bn(c):
        gamma = 1.0 + 0.1 * jax.random.normal(next(keys), (c,), jnp.float32)
        beta = 0.1 * jax.random.normal(next(keys), (c,), jnp.float32)
        mean = 0.1 * jax.random.normal(next(keys), (c,), jnp.float32)
        var = 0.5 + jax.random.uniform(next(keys), (c,), jnp.float32)
        scale = gamma / jnp.sqrt(var + 1e-5)
        bias = beta - mean * scale
        return scale, bias

    def dxcorr(cin, hid, cout):
        wk = conv_w(hid, cin, 3); sk, bk = bn(hid)
        ws = conv_w(hid, cin, 3); ss, bs = bn(hid)
        w1 = conv_w(hid, hid, 1); s1, b1 = bn(hid)
        w2 = conv_w(cout, hid, 1)
        b2 = 0.1 * jax.random.normal(next(keys), (cout,), jnp.float32)
        return dict(wk=wk, sk=sk, bk=bk, ws=ws, ss=ss, bs=bs,
                    w1=w1, s1=s1, b1=b1, w2=w2, b2=b2)

    neck = []
    for cin in in_channels:
        w = conv_w(hidden, cin, 1)
        scale, bias = bn(hidden)
        neck.append(dict(w=w, scale=scale, bias=bias))

    rpn = [dict(cls=dxcorr(hidden, hidden, 2 * anchor_num),
                loc=dxcorr(hidden, hidden, 4 * anchor_num))
           for _ in in_channels]

    return dict(neck=neck, rpn=rpn,
                cls_weight=jnp.ones((3,), jnp.float32),
                loc_weight=jnp.ones((3,), jnp.float32))


# -----------------------------------------------------------------------------
if __name__ == "__main__":
    _probe_roll_direction()

    key = jax.random.PRNGKey(0)
    B = 2
    backbone_channels = (32, 48, 64)   # scaled-down [512, 1024, 2048]
    hidden = 16                        # scaled-down 256
    anchor_num = 2                     # scaled-down 5
    Hz, Hx = 9, 24                     # template / search feature spatial

    kp, kz, kx = jax.random.split(key, 3)
    params = init_params(kp, backbone_channels, hidden, anchor_num)

    zkeys = jax.random.split(kz, 3)
    xkeys = jax.random.split(kx, 3)
    z_feats = [jax.random.normal(zkeys[i], (B, backbone_channels[i], Hz, Hz),
                                 jnp.float32) for i in range(3)]
    x_feats = [jax.random.normal(xkeys[i], (B, backbone_channels[i], Hx, Hx),
                                 jnp.float32) for i in range(3)]

    # Exact-path (f32) check against a plain-JAX mirror of the PyTorch module.
    fwd_f32 = jax.jit(functools.partial(siamrpnpp_forward,
                                        compute_dtype=jnp.float32))
    cls32, loc32, _ = jax.block_until_ready(fwd_f32(z_feats, x_feats, params))
    ref_cls, ref_loc = jax.block_until_ready(
        jax.jit(_reference_forward)(z_feats, x_feats, params))
    # template: 9 -> crop 7 -> conv3x3 -> 5 ; search: 24 -> conv3x3 -> 22
    # xcorr: 22 - 5 + 1 = 18
    assert cls32.shape == ref_cls.shape == (B, 2 * anchor_num, 18, 18)
    assert loc32.shape == ref_loc.shape == (B, 4 * anchor_num, 18, 18)
    assert jnp.allclose(cls32, ref_cls, rtol=2e-2, atol=2e-2), \
        float(jnp.max(jnp.abs(cls32 - ref_cls)))
    assert jnp.allclose(loc32, ref_loc, rtol=2e-2, atol=2e-2), \
        float(jnp.max(jnp.abs(loc32 - ref_loc)))

    # Fast (default) path: bf16 activations/weights, f32 accumulation.
    fwd = jax.jit(siamrpnpp_forward)
    cls, loc, cls_ls = jax.block_until_ready(fwd(z_feats, x_feats, params))
    assert cls.shape == (B, 2 * anchor_num, 18, 18), cls.shape
    assert loc.shape == (B, 4 * anchor_num, 18, 18), loc.shape
    assert cls_ls.shape == (B, anchor_num, 18, 18, 2), cls_ls.shape
    assert bool(jnp.all(jnp.isfinite(cls))) and bool(jnp.all(jnp.isfinite(loc)))

    def _rel(a, b):
        a = a.astype(jnp.float32); b = b.astype(jnp.float32)
        return float(jnp.linalg.norm(a - b) / jnp.linalg.norm(b))

    # Norm-relative tolerance for the mixed-precision (bf16) default path.
    assert _rel(cls, ref_cls) < 5e-2, _rel(cls, ref_cls)
    assert _rel(loc, ref_loc) < 5e-2, _rel(loc, ref_loc)

    print("KERNEL_OK")
</pallas_src>

<mosaic_0001>
module attributes {stable_mosaic.version = 11 : i64} {
  func.func @kern(%arg0: memref<8x128xf32, #tpu.memory_space<vmem>>, %arg1: memref<8x128xf32, #tpu.memory_space<vmem>>) attributes {dimension_semantics = [], scalar_prefetch = 0 : i64, scratch_operands = 0 : i64, tpu.core_type = #tpu.core_type<tc>} {
    %c0 = arith.constant 0 : index
    %c0_0 = arith.constant 0 : index
    %0 = vector.load %arg0[%c0, %c0_0] : memref<8x128xf32, #tpu.memory_space<vmem>>, vector<8x128xf32>
    %c1_i32 = arith.constant 1 : i32
    %1 = tpu.dynamic_rotate %0 by %c1_i32 dim 1 : vector<8x128xf32>, i32 -> vector<8x128xf32>
    %c0_1 = arith.constant 0 : index
    %c0_2 = arith.constant 0 : index
    %2 = vector.load %arg1[%c0_1, %c0_2] : memref<8x128xf32, #tpu.memory_space<vmem>>, vector<8x128xf32>
    tpu.vector_store %arg1[%c0_1, %c0_2], %1 {strides = array<i32>} : memref<8x128xf32, #tpu.memory_space<vmem>>, vector<8x128xf32>,
    return
  }
}

</mosaic_0001>

<bundles_post_ra>
// kernel: tpu_custom_call.1
= control target key start
LH: loop header
LB: loop body
LE: loop exit
PB: predicated region body
PF: predicated region fallthrough
CT: control target
= control target key end

     0   :  { %6 = vsyncpa [#allocation3], 0  ;;  %s128_s0 = inlined_call_operand.hbm [shape: f32[8,128], index: 0, kind: input, shape index: {}]   ;;  %s129_s1 = inlined_call_operand.hbm [shape: f32[8,128], index: 1, kind: output, shape index: {}]  }
   0x1   :  { %7 = vsyncpa [#allocation4], 0  ;;  %s91_s6 = smov [#allocation2]   ;;  %s43_s10 = scalar_lea.hbm %s128_s0, 128 }
   0x2   :  { %s14_s7 = sshll.u32 %s91_s6, 4  ;;  %p44_p0 = scmp.ne.s32.totalorder %s128_s0, %s43_s10  ;;  %s15_s7 = int_to_ptr.vmem [resolvable:$true] %s14_s7 }
   0x3   :  { %p47_p1 = scmp.lt.u32.totalorder %s43_s10, %s128_s0 }
   0x5   :  { %p49_p2 = pnand %p47_p1, %p44_p0 }
   0x7   :  { %52 = shalt.err (!%p49_p2)
}
   0x8   :  { %s53_s15 = scalar_lea.vmem %s15_s7, 128  ;;  %p58_p4 = scmp.lt.s32.totalorder %s15_s7, %s15_s7 }
   0x9   :  { %p54_p3 = scmp.ne.s32.totalorder %s15_s7, %s53_s15  ;;  %p59_p5 = scmp.lt.s32.totalorder %s53_s15, %s53_s15 }
   0xb   :  { %p60_p6 = por %p59_p5, %p58_p4 }
   0xd   :  { %p61_p7 = pnand %p60_p6, %p54_p3 }
   0xf   :  { %64 = shalt.err (!%p61_p7)
}
  0x10   :  { %17 = dma.hbm_to_vmem [thread:$0]  %s128_s0, 128, %s15_s7, [#allocation3]  }
  0x11   :  { %87 = dma.done.wait [#allocation3], 128  }
  0x12   :  { %88 = vsyncadd [#allocation3], 4294967168  ;;  %v21_v0 = vld [vmem:[#allocation2] sm:$0xff]  ;;  %s92_s18 = smov 1   ;;  %s93_s19 = smov [#allocation5]  }
  0x13   :  { %22 = vrot.lane.b32.xlu0 %v21_v0, %s92_s18  ;;  %s31_s20 = sshll.u32 %s93_s19, 4  ;;  %s32_s20 = int_to_ptr.vmem [resolvable:$true] %s31_s20 }
  0x14   :  { %s65_s21 = scalar_lea.vmem %s32_s20, 128  ;;  %p70_p9 = scmp.lt.s32.totalorder %s32_s20, %s32_s20 }
  0x15   :  { %p66_p8 = scmp.ne.s32.totalorder %s32_s20, %s65_s21  ;;  %p71_p10 = scmp.lt.s32.totalorder %s65_s21, %s65_s21 }
  0x17   :  { %p72_p11 = por %p71_p10, %p70_p9 }
  0x19   :  { %p73_p12 = pnand %p72_p11, %p66_p8 }
  0x85   :  { %v23_v1 = vpop.permute.xlu0 %22 }
  0x86   :  { %24 = vst [vmem:[#allocation5] sm:$0xff] %v23_v1 }
  0x87   :  { %76 = shalt.err (!%p73_p12)
}
  0x88   :  { %s77_s0 = scalar_lea.hbm %s129_s1, 128 }
  0x89   :  { %p78_p13 = scmp.ne.s32.totalorder %s129_s1, %s77_s0  ;;  %p81_p0 = scmp.lt.u32.totalorder %s77_s0, %s129_s1 }
  0x8b   :  { %p83_p1 = pnand %p81_p0, %p78_p13 }
  0x8d   :  { %86 = shalt.err (!%p83_p1)
}
  0x8e   :  { %34 = dma.vmem_to_hbm [thread:$0]  %s32_s20, 128, %s129_s1, [#allocation4]  }
  0x8f   :  { %89 = dma.done.wait [#allocation4], 128  }
  0x90   :  { %90 = vsyncadd [#allocation4], 4294967168 }
  0x91   :  { %38 = vsyncpa [#allocation3], 1 }
  0x92   :  { %39 = vsyncpa [#allocation4], 1 }

</bundles_post_ra>
